<compile_context>
chip_gen: v7x
topology: tpu7x:2x2x1
jax: 0.10.0
libtpu: 0.0.40
codegen_flags: <defaults>
</compile_context>

<pallas_src>
import functools

import jax
import jax.numpy as jnp
from jax import lax
from jax.experimental import pallas as pl
from jax.experimental.pallas import tpu as pltpu


def _attn_weights_kernel(x_ref, w_ref, gamma_ref, beta_ref, o_ref,
                         sum_ref, sumsq_ref, *,
                         hw_total, n_chunks, unroll, eps, gn_eps):
    # x_ref:     (Bt, C, HWt)      native dtype (HWt = n_chunks * 128, zero-padded tail ok)
    # w_ref:     (C, A)            f32 conv1x1 weight (transposed), VMEM-resident
    # gamma_ref: (1, A), beta_ref: (1, A)
    # o_ref:     (1, Bt, A)
    # sum_ref / sumsq_ref: (Bt, C, 128) f32 per-lane VMEM accumulators
    hw_step = pl.program_id(1)

    @pl.when(hw_step == 0)
    def _init():
        sum_ref[...] = jnp.zeros_like(sum_ref)
        sumsq_ref[...] = jnp.zeros_like(sumsq_ref)

    # --- streaming spatial reduction: elementwise VPU adds into per-lane accumulators ---
    def _chunk(k, carry):
        off = pl.multiple_of(k * 128, 128)
        xc = x_ref[:, :, pl.ds(off, 128)].astype(jnp.float32)   # (Bt, C, 128)
        sum_ref[...] += xc
        sumsq_ref[...] += xc * xc
        return carry

    lax.fori_loop(0, n_chunks, _chunk, 0, unroll=unroll)

    @pl.when(hw_step == pl.num_programs(1) - 1)
    def _epilogue():
        n = float(hw_total)
        # single cross-lane reduce (XLU) per B tile, once, in the epilogue
        s = jnp.sum(sum_ref[...], axis=-1)                       # (Bt, C)
        sq = jnp.sum(sumsq_ref[...], axis=-1)                    # (Bt, C)
        mean = s / n
        # unbiased variance (torch.var_mean default); clamp guards catastrophic cancellation
        var = (sq - n * mean * mean) / (n - 1.0)
        var = jnp.maximum(var, 0.0)
        y = mean * jax.lax.rsqrt(var + eps)                      # (Bt, C)

        # 1x1 conv, bias=False  ==  (Bt, C) @ (C, A); tiny, hidden under the reduce
        z = jnp.dot(y, w_ref[...], preferred_element_type=jnp.float32)  # (Bt, A)

        # GroupNorm(num_groups=1): per-sample normalization over all A channels
        mu = jnp.mean(z, axis=-1, keepdims=True)
        v = jnp.mean((z - mu) * (z - mu), axis=-1, keepdims=True)       # biased var
        zn = (z - mu) * jax.lax.rsqrt(v + gn_eps)
        zn = zn * gamma_ref[...] + beta_ref[...]

        # HSigmoidv2: relu6(x + 3) / 6
        o_ref[0] = jnp.clip((zn + 3.0) / 6.0, 0.0, 1.0).astype(o_ref.dtype)


def attn_weights(x_nchw, conv_w, gamma, beta, *, eps=1e-3, gn_eps=1e-5,
                 b_tile=None, hw_tile=None):
    """x_nchw: (B, C, H, W) any float dtype; conv_w: (A, C) [Conv2d(C, A, 1) weight squeezed]."""
    b, c, h, w = x_nchw.shape
    a = conv_w.shape[0]
    hw = h * w
    # Unbiased variance divides by (H*W - 1); H*W == 1 would produce inf/NaN.
    assert hw > 1, "AttnWeights with use_rsd requires H*W > 1"

    wt = jnp.transpose(conv_w).astype(jnp.float32)      # (C, A)
    gamma2 = gamma.reshape(1, a).astype(jnp.float32)
    beta2 = beta.reshape(1, a).astype(jnp.float32)

    # --- B tile: split so grid[0] >= 2 when b >= 2 (v7x has 2 TensorCores), keep blocks small ---
    if b_tile is None:
        cap = max(1, min(8, b // 2))
        b_tile = max(d for d in range(1, cap + 1) if b % d == 0)
    assert b % b_tile == 0

    # --- HW tile: sized from a VMEM byte budget, lane-aligned (multiple of 128) ---
    if hw_tile is None:
        itemsize = jnp.dtype(x_nchw.dtype).itemsize
        bytes_per_hw_col = max(1, b_tile * c * itemsize)
        budget = 6 * 1024 * 1024                         # per x block; double-buffered ~12 MiB
        hw_tile = (budget // bytes_per_hw_col) // 128 * 128
        hw_tile = int(max(128, min(hw_tile, pl.cdiv(hw, 128) * 128)))
    assert hw_tile >= 128 and hw_tile % 128 == 0

    # --- zero-pad flattened HW to a multiple of hw_tile (zeros add nothing to sum/sumsq) ---
    hw_padded = pl.cdiv(hw, hw_tile) * hw_tile
    x3 = x_nchw.reshape(b, c, hw)                        # keep native dtype over HBM
    if hw_padded != hw:
        x3 = jnp.pad(x3, ((0, 0), (0, 0), (0, hw_padded - hw)))

    grid = (b // b_tile, hw_padded // hw_tile)
    n_chunks = hw_tile // 128
    unroll = max(1, min(n_chunks, 8))

    out = pl.pallas_call(
        functools.partial(_attn_weights_kernel, hw_total=hw, n_chunks=n_chunks,
                          unroll=unroll, eps=eps, gn_eps=gn_eps),
        # 3-D output so the block's last two dims span their full extents.
        out_shape=jax.ShapeDtypeStruct((b // b_tile, b_tile, a), jnp.float32),
        grid_spec=pltpu.PrefetchScalarGridSpec(
            num_scalar_prefetch=0,
            grid=grid,
            in_specs=[
                # x: tiled over batch and spatial; C kept whole (full-dim block).
                pl.BlockSpec((b_tile, c, hw_tile), lambda bi, hi: (bi, 0, hi)),
                # conv weight / gamma / beta: constant block -> VMEM-resident across grid.
                pl.BlockSpec((c, a), lambda bi, hi: (0, 0)),
                pl.BlockSpec((1, a), lambda bi, hi: (0, 0)),
                pl.BlockSpec((1, a), lambda bi, hi: (0, 0)),
            ],
            # Output block constant across the HW (reduction) axis -> accumulator pattern.
            out_specs=pl.BlockSpec((1, b_tile, a), lambda bi, hi: (bi, 0, 0)),
            scratch_shapes=[
                pltpu.VMEM((b_tile, c, 128), jnp.float32),   # per-lane running sum
                pltpu.VMEM((b_tile, c, 128), jnp.float32),   # per-lane running sum of squares
            ],
        ),
        compiler_params=pltpu.CompilerParams(
            dimension_semantics=("parallel", "arbitrary"),
            # >= 32 MiB (v5e default is only 16 MiB), <= v7x's 64 MiB physical VMEM.
            vmem_limit_bytes=48 * 1024 * 1024,
        ),
    )(x3, wt, gamma2, beta2)
    return out.reshape(b, a)


def _reference(x_nchw, conv_w, gamma, beta, *, eps=1e-3, gn_eps=1e-5):
    b, c, _, _ = x_nchw.shape
    xr = x_nchw.astype(jnp.float32).reshape(b, c, -1)
    mean = xr.mean(-1)
    var = xr.var(-1, ddof=1)
    y = mean * jax.lax.rsqrt(var + eps)
    z = y @ conv_w.T
    mu = z.mean(-1, keepdims=True)
    v = ((z - mu) ** 2).mean(-1, keepdims=True)
    zn = (z - mu) / jnp.sqrt(v + gn_eps) * gamma[None, :] + beta[None, :]
    return jnp.clip((zn + 3.0) / 6.0, 0.0, 1.0)


if __name__ == "__main__":
    B, C, H, W = 2, 4, 16, 16
    A = 8  # num_affine_trans

    key = jax.random.PRNGKey(0)
    kx, kw = jax.random.split(key)
    x = jax.random.normal(kx, (B, C, H, W), dtype=jnp.float32)

    # kaiming_init (mode='fan_out', relu): std = sqrt(2 / fan_out), fan_out = A*1*1
    conv_w = jax.random.normal(kw, (A, C), dtype=jnp.float32) * jnp.sqrt(2.0 / A)
    # constant_init(norm, 1): gamma = 1, beta = 0
    gamma = jnp.ones((A,), dtype=jnp.float32)
    beta = jnp.zeros((A,), dtype=jnp.float32)

    ref = _reference(x, conv_w, gamma, beta)

    # 1) Default tiling: B split across 2 grid tiles (v7x megacore path),
    #    hw_tile=256 -> two 128-lane chunks accumulated per grid step.
    out = jax.block_until_ready(attn_weights(x, conv_w, gamma, beta))
    assert out.shape == (B, A)
    assert jnp.allclose(out, ref, atol=1e-5, rtol=1e-5), (out, ref)

    # 2) Multi-step HW accumulation path (hw_tile=128 -> 2 grid steps along HW).
    out2 = jax.block_until_ready(attn_weights(x, conv_w, gamma, beta, hw_tile=128))
    assert jnp.allclose(out2, ref, atol=1e-5, rtol=1e-5), (out2, ref)

    # 3) Non-multiple-of-128 spatial size -> exercises the zero-padding path.
    x_odd = jax.random.normal(kx, (B, C, 12, 12), dtype=jnp.float32)
    ref_odd = _reference(x_odd, conv_w, gamma, beta)
    out3 = jax.block_until_ready(attn_weights(x_odd, conv_w, gamma, beta))
    assert jnp.allclose(out3, ref_odd, atol=1e-5, rtol=1e-5), (out3, ref_odd)

    print("KERNEL_OK")
</pallas_src>

<mosaic_0001>
module attributes {stable_mosaic.version = 11 : i64} {
  func.func @_attn_weights_kernel(%arg0: i32, %arg1: i32, %arg2: memref<1x4x256xf32, #tpu.memory_space<vmem>>, %arg3: memref<4x8xf32, #tpu.memory_space<vmem>>, %arg4: memref<1x8xf32, #tpu.memory_space<vmem>>, %arg5: memref<1x8xf32, #tpu.memory_space<vmem>>, %arg6: memref<1x1x8xf32, #tpu.memory_space<vmem>>, %arg7: memref<1x4x128xf32, #tpu.memory_space<vmem>>, %arg8: memref<1x4x128xf32, #tpu.memory_space<vmem>>) attributes {dimension_semantics = [#tpu.dimension_semantics<parallel>, #tpu.dimension_semantics<arbitrary>], iteration_bounds = array<i64: 2, 1>, scalar_prefetch = 0 : i64, scratch_operands = 2 : i64, tpu.core_type = #tpu.core_type<tc>, window_params = [{transform_indices = @transform_0, window_bounds = array<i64: 1, 4, 256>}, {pipeline_mode = #tpu.pipeline_mode<synchronous>, transform_indices = @transform_1, window_bounds = array<i64: 4, 8>}, {pipeline_mode = #tpu.pipeline_mode<synchronous>, transform_indices = @transform_2, window_bounds = array<i64: 1, 8>}, {pipeline_mode = #tpu.pipeline_mode<synchronous>, transform_indices = @transform_3, window_bounds = array<i64: 1, 8>}, {transform_indices = @transform_4, window_bounds = array<i64: 1, 1, 8>}]} {
    %c0_i32 = arith.constant 0 : i32
    %0 = arith.cmpi eq, %arg1, %c0_i32 : i32
    %1 = arith.extui %0 : i1 to i32
    %c0_i32_0 = arith.constant 0 : i32
    %2 = arith.cmpi ne, %1, %c0_i32_0 : i32
    scf.if %2 {
      %cst = arith.constant 0.000000e+00 : f32
      %28 = vector.broadcast %cst : f32 to vector<1x4x128xf32>
      %c0_32 = arith.constant 0 : index
      %c0_33 = arith.constant 0 : index
      %c0_34 = arith.constant 0 : index
      %29 = vector.load %arg7[%c0_32, %c0_33, %c0_34] : memref<1x4x128xf32, #tpu.memory_space<vmem>>, vector<1x4x128xf32>
      tpu.vector_store %arg7[%c0_32, %c0_33, %c0_34], %28 {strides = array<i32>} : memref<1x4x128xf32, #tpu.memory_space<vmem>>, vector<1x4x128xf32>,
      %cst_35 = arith.constant 0.000000e+00 : f32
      %30 = vector.broadcast %cst_35 : f32 to vector<1x4x128xf32>
      %c0_36 = arith.constant 0 : index
      %c0_37 = arith.constant 0 : index
      %c0_38 = arith.constant 0 : index
      %31 = vector.load %arg8[%c0_36, %c0_37, %c0_38] : memref<1x4x128xf32, #tpu.memory_space<vmem>>, vector<1x4x128xf32>
      tpu.vector_store %arg8[%c0_36, %c0_37, %c0_38], %30 {strides = array<i32>} : memref<1x4x128xf32, #tpu.memory_space<vmem>>, vector<1x4x128xf32>,
    } else {
    }
    %c0_i32_1 = arith.constant 0 : i32
    %c128_i32 = arith.constant 128 : i32
    %3 = arith.muli %c0_i32_1, %c128_i32 : i32
    %4 = tpu.assume_multiple %3, 128 : i32
    %c0 = arith.constant 0 : index
    %c0_2 = arith.constant 0 : index
    %5 = arith.index_cast %4 : i32 to index
    %6 = vector.load %arg2[%c0, %c0_2, %5] : memref<1x4x256xf32, #tpu.memory_space<vmem>>, vector<1x4x128xf32>
    %c0_3 = arith.constant 0 : index
    %c0_4 = arith.constant 0 : index
    %c0_5 = arith.constant 0 : index
    %7 = vector.load %arg7[%c0_3, %c0_4, %c0_5] : memref<1x4x128xf32, #tpu.memory_space<vmem>>, vector<1x4x128xf32>
    %8 = arith.addf %7, %6 : vector<1x4x128xf32>
    %c0_6 = arith.constant 0 : index
    %c0_7 = arith.constant 0 : index
    %c0_8 = arith.constant 0 : index
    %9 = vector.load %arg7[%c0_6, %c0_7, %c0_8] : memref<1x4x128xf32, #tpu.memory_space<vmem>>, vector<1x4x128xf32>
    tpu.vector_store %arg7[%c0_6, %c0_7, %c0_8], %8 {strides = array<i32>} : memref<1x4x128xf32, #tpu.memory_space<vmem>>, vector<1x4x128xf32>,
    %c0_9 = arith.constant 0 : index
    %c0_10 = arith.constant 0 : index
    %c0_11 = arith.constant 0 : index
    %10 = vector.load %arg8[%c0_9, %c0_10, %c0_11] : memref<1x4x128xf32, #tpu.memory_space<vmem>>, vector<1x4x128xf32>
    %11 = arith.mulf %6, %6 : vector<1x4x128xf32>
    %12 = arith.addf %10, %11 : vector<1x4x128xf32>
    %c0_12 = arith.constant 0 : index
    %c0_13 = arith.constant 0 : index
    %c0_14 = arith.constant 0 : index
    %13 = vector.load %arg8[%c0_12, %c0_13, %c0_14] : memref<1x4x128xf32, #tpu.memory_space<vmem>>, vector<1x4x128xf32>
    tpu.vector_store %arg8[%c0_12, %c0_13, %c0_14], %12 {strides = array<i32>} : memref<1x4x128xf32, #tpu.memory_space<vmem>>, vector<1x4x128xf32>,
    %c1_i32 = arith.constant 1 : i32
    %c128_i32_15 = arith.constant 128 : i32
    %14 = arith.muli %c1_i32, %c128_i32_15 : i32
    %15 = tpu.assume_multiple %14, 128 : i32
    %c0_16 = arith.constant 0 : index
    %c0_17 = arith.constant 0 : index
    %16 = arith.index_cast %15 : i32 to index
    %17 = vector.load %arg2[%c0_16, %c0_17, %16] : memref<1x4x256xf32, #tpu.memory_space<vmem>>, vector<1x4x128xf32>
    %c0_18 = arith.constant 0 : index
    %c0_19 = arith.constant 0 : index
    %c0_20 = arith.constant 0 : index
    %18 = vector.load %arg7[%c0_18, %c0_19, %c0_20] : memref<1x4x128xf32, #tpu.memory_space<vmem>>, vector<1x4x128xf32>
    %19 = arith.addf %18, %17 : vector<1x4x128xf32>
    %c0_21 = arith.constant 0 : index
    %c0_22 = arith.constant 0 : index
    %c0_23 = arith.constant 0 : index
    %20 = vector.load %arg7[%c0_21, %c0_22, %c0_23] : memref<1x4x128xf32, #tpu.memory_space<vmem>>, vector<1x4x128xf32>
    tpu.vector_store %arg7[%c0_21, %c0_22, %c0_23], %19 {strides = array<i32>} : memref<1x4x128xf32, #tpu.memory_space<vmem>>, vector<1x4x128xf32>,
    %c0_24 = arith.constant 0 : index
    %c0_25 = arith.constant 0 : index
    %c0_26 = arith.constant 0 : index
    %21 = vector.load %arg8[%c0_24, %c0_25, %c0_26] : memref<1x4x128xf32, #tpu.memory_space<vmem>>, vector<1x4x128xf32>
    %22 = arith.mulf %17, %17 : vector<1x4x128xf32>
    %23 = arith.addf %21, %22 : vector<1x4x128xf32>
    %c0_27 = arith.constant 0 : index
    %c0_28 = arith.constant 0 : index
    %c0_29 = arith.constant 0 : index
    %24 = vector.load %arg8[%c0_27, %c0_28, %c0_29] : memref<1x4x128xf32, #tpu.memory_space<vmem>>, vector<1x4x128xf32>
    tpu.vector_store %arg8[%c0_27, %c0_28, %c0_29], %23 {strides = array<i32>} : memref<1x4x128xf32, #tpu.memory_space<vmem>>, vector<1x4x128xf32>,
    %c2_i32 = arith.constant 2 : i32
    %c0_i32_30 = arith.constant 0 : i32
    %25 = arith.cmpi eq, %arg1, %c0_i32_30 : i32
    %26 = arith.extui %25 : i1 to i32
    %c0_i32_31 = arith.constant 0 : i32
    %27 = arith.cmpi ne, %26, %c0_i32_31 : i32
    scf.if %27 {
      %c0_32 = arith.constant 0 : index
      %c0_33 = arith.constant 0 : index
      %c0_34 = arith.constant 0 : index
      %28 = vector.load %arg7[%c0_32, %c0_33, %c0_34] : memref<1x4x128xf32, #tpu.memory_space<vmem>>, vector<1x4x128xf32>
      %cst = arith.constant dense<0.000000e+00> : vector<1x4xf32>
      %29 = vector.multi_reduction <add>, %28, %cst [2] : vector<1x4x128xf32> to vector<1x4xf32>
      %c0_35 = arith.constant 0 : index
      %c0_36 = arith.constant 0 : index
      %c0_37 = arith.constant 0 : index
      %30 = vector.load %arg8[%c0_35, %c0_36, %c0_37] : memref<1x4x128xf32, #tpu.memory_space<vmem>>, vector<1x4x128xf32>
      %cst_38 = arith.constant dense<0.000000e+00> : vector<1x4xf32>
      %31 = vector.multi_reduction <add>, %30, %cst_38 [2] : vector<1x4x128xf32> to vector<1x4xf32>
      %cst_39 = arith.constant 2.560000e+02 : f32
      %32 = vector.broadcast %cst_39 : f32 to vector<1x4xf32>
      %33 = arith.divf %29, %32 : vector<1x4xf32>
      %cst_40 = arith.constant 2.560000e+02 : f32
      %34 = vector.broadcast %cst_40 : f32 to vector<1x4xf32>
      %35 = arith.mulf %34, %33 : vector<1x4xf32>
      %36 = arith.mulf %35, %33 : vector<1x4xf32>
      %37 = arith.subf %31, %36 : vector<1x4xf32>
      %cst_41 = arith.constant 2.550000e+02 : f32
      %38 = vector.broadcast %cst_41 : f32 to vector<1x4xf32>
      %39 = arith.divf %37, %38 : vector<1x4xf32>
      %cst_42 = arith.constant 0.000000e+00 : f32
      %40 = vector.broadcast %cst_42 : f32 to vector<1x4xf32>
      %41 = arith.maximumf %39, %40 : vector<1x4xf32>
      %cst_43 = arith.constant 1.000000e-03 : f32
      %42 = vector.broadcast %cst_43 : f32 to vector<1x4xf32>
      %43 = arith.addf %41, %42 : vector<1x4xf32>
      %44 = math.rsqrt %43 : vector<1x4xf32>
      %45 = arith.mulf %33, %44 : vector<1x4xf32>
      %c0_44 = arith.constant 0 : index
      %c0_45 = arith.constant 0 : index
      %46 = vector.load %arg3[%c0_44, %c0_45] : memref<4x8xf32, #tpu.memory_space<vmem>>, vector<4x8xf32>
      %cst_46 = arith.constant dense<0.000000e+00> : vector<1x8xf32>
      %47 = tpu.matmul %45, %46, %cst_46 {dimension_numbers = #tpu.dot_dimension_numbers<[1], [0], [0], [1], [0, 0, 1, 1], [], []>} : vector<1x4xf32>, vector<4x8xf32>, vector<1x8xf32> -> vector<1x8xf32>
      %cst_47 = arith.constant dense<0.000000e+00> : vector<1xf32>
      %48 = vector.multi_reduction <add>, %47, %cst_47 [1] : vector<1x8xf32> to vector<1xf32>
      %49 = vector.shape_cast %48 : vector<1xf32> to vector<1x1xf32>
      %cst_48 = arith.constant 8.000000e+00 : f32
      %50 = vector.broadcast %cst_48 : f32 to vector<1x1xf32>
      %51 = arith.divf %49, %50 : vector<1x1xf32>
      %52 = vector.broadcast %51 : vector<1x1xf32> to vector<1x8xf32>
      %53 = arith.subf %47, %52 : vector<1x8xf32>
      %54 = vector.broadcast %51 : vector<1x1xf32> to vector<1x8xf32>
      %55 = arith.subf %47, %54 : vector<1x8xf32>
      %56 = arith.mulf %53, %55 : vector<1x8xf32>
      %cst_49 = arith.constant dense<0.000000e+00> : vector<1xf32>
      %57 = vector.multi_reduction <add>, %56, %cst_49 [1] : vector<1x8xf32> to vector<1xf32>
      %58 = vector.shape_cast %57 : vector<1xf32> to vector<1x1xf32>
      %cst_50 = arith.constant 8.000000e+00 : f32
      %59 = vector.broadcast %cst_50 : f32 to vector<1x1xf32>
      %60 = arith.divf %58, %59 : vector<1x1xf32>
      %61 = vector.broadcast %51 : vector<1x1xf32> to vector<1x8xf32>
      %62 = arith.subf %47, %61 : vector<1x8xf32>
      %cst_51 = arith.constant 9.99999974E-6 : f32
      %63 = vector.broadcast %cst_51 : f32 to vector<1x1xf32>
      %64 = arith.addf %60, %63 : vector<1x1xf32>
      %65 = math.rsqrt %64 : vector<1x1xf32>
      %66 = vector.broadcast %65 : vector<1x1xf32> to vector<1x8xf32>
      %67 = arith.mulf %62, %66 : vector<1x8xf32>
      %c0_52 = arith.constant 0 : index
      %c0_53 = arith.constant 0 : index
      %68 = vector.load %arg4[%c0_52, %c0_53] : memref<1x8xf32, #tpu.memory_space<vmem>>, vector<1x8xf32>
      %69 = arith.mulf %67, %68 : vector<1x8xf32>
      %c0_54 = arith.constant 0 : index
      %c0_55 = arith.constant 0 : index
      %70 = vector.load %arg5[%c0_54, %c0_55] : memref<1x8xf32, #tpu.memory_space<vmem>>, vector<1x8xf32>
      %71 = arith.addf %69, %70 : vector<1x8xf32>
      %cst_56 = arith.constant 3.000000e+00 : f32
      %72 = vector.broadcast %cst_56 : f32 to vector<1x8xf32>
      %73 = arith.addf %71, %72 : vector<1x8xf32>
      %cst_57 = arith.constant 6.000000e+00 : f32
      %74 = vector.broadcast %cst_57 : f32 to vector<1x8xf32>
      %75 = arith.divf %73, %74 : vector<1x8xf32>
      %cst_58 = arith.constant 0.000000e+00 : f32
      %cst_59 = arith.constant 1.000000e+00 : f32
      %76 = vector.broadcast %cst_58 : f32 to vector<1x8xf32>
      %77 = arith.maximumf %76, %75 : vector<1x8xf32>
      %78 = vector.broadcast %cst_59 : f32 to vector<1x8xf32>
      %79 = arith.minimumf %78, %77 : vector<1x8xf32>
      %c0_60 = arith.constant 0 : index
      %c0_61 = arith.constant 0 : index
      %c0_62 = arith.constant 0 : index
      %80 = vector.load %arg6[%c0_60, %c0_61, %c0_62] : memref<1x1x8xf32, #tpu.memory_space<vmem>>, vector<1x1x8xf32>
      %81 = vector.shape_cast %80 : vector<1x1x8xf32> to vector<1x8xf32>
      %82 = vector.shape_cast %79 : vector<1x8xf32> to vector<1x1x8xf32>
      tpu.vector_store %arg6[%c0_60, %c0_61, %c0_62], %82 {strides = array<i32>} : memref<1x1x8xf32, #tpu.memory_space<vmem>>, vector<1x1x8xf32>,
    } else {
    }
    return
  }
  func.func @transform_0(%arg0: i32, %arg1: i32) -> (i32, i32, i32) {
    %c0_i32 = arith.constant 0 : i32
    %c0_i32_0 = arith.constant 0 : i32
    return %arg0, %c0_i32, %arg1 : i32, i32, i32
  }
  func.func @transform_1(%arg0: i32, %arg1: i32) -> (i32, i32) {
    %c0_i32 = arith.constant 0 : i32
    %c0_i32_0 = arith.constant 0 : i32
    %c0_i32_1 = arith.constant 0 : i32
    return %c0_i32, %c0_i32_0 : i32, i32
  }
  func.func @transform_2(%arg0: i32, %arg1: i32) -> (i32, i32) {
    %c0_i32 = arith.constant 0 : i32
    %c0_i32_0 = arith.constant 0 : i32
    %c0_i32_1 = arith.constant 0 : i32
    return %c0_i32, %c0_i32_0 : i32, i32
  }
  func.func @transform_3(%arg0: i32, %arg1: i32) -> (i32, i32) {
    %c0_i32 = arith.constant 0 : i32
    %c0_i32_0 = arith.constant 0 : i32
    %c0_i32_1 = arith.constant 0 : i32
    return %c0_i32, %c0_i32_0 : i32, i32
  }
  func.func @transform_4(%arg0: i32, %arg1: i32) -> (i32, i32, i32) {
    %c0_i32 = arith.constant 0 : i32
    %c0_i32_0 = arith.constant 0 : i32
    %c0_i32_1 = arith.constant 0 : i32
    return %arg0, %c0_i32, %c0_i32_0 : i32, i32, i32
  }
}

</mosaic_0001>

<bundles_post_ra>
// kernel: tpu_custom_call.1
= control target key start
LH: loop header
LB: loop body
LE: loop exit
PB: predicated region body
PF: predicated region fallthrough
CT: control target
= control target key end

     0   :  { %9 = vsyncpa [#allocation5], 0  ;;  %s1004_s0 = inlined_call_operand.hbm [shape: f32[2,4,256], index: 0, kind: input, shape index: {}]   ;;  %s1005_s1 = inlined_call_operand.hbm [shape: f32[4,8], index: 1, kind: input, shape index: {}]   ;;  %s1006_s2 = inlined_call_operand.vmem [shape: f32[1,8], index: 2, kind: input, shape index: {}]   ;;  %s1007_s3 = inlined_call_operand.vmem [shape: f32[1,8], index: 3, kind: input, shape index: {}]   ;;  %s1008_s4 = inlined_call_operand.hbm [shape: f32[2,1,8], index: 4, kind: output, shape index: {}]  }
   0x1   :  { %11 = vsyncpa [#allocation5 + $0x1], 0 }
   0x2   :  { %12 = vsyncpa [#allocation8], 0 }
   0x3   :  { %13 = vsyncpa [#allocation6], 0 }
   0x4   :  { %15 = vsyncpa [#allocation6 + $0x1], 0  ;;  %s778_s15 = smov 0   ;;  %s780_s16 = smov 0  }
   0x5   :  { %s782_s17 = smov 0   ;;  %s784_s18 = smov 0  }
   0x6   :  { %s786_s19 = smov 0   ;;  %s788_s20 = smov 0  }
   0x7 LB: > { %s498_s21 = sadd.s32 4294967295, %s746_s20   ;;  %s499_s22 = sadd.s32 4294967294, %s746_s20   ;;  %s746_s20 = sphi %s788_s20, %s21_s20   ;;  %s742_s19 = sphi %s786_s19, %s1033_s19   ;;  %s738_s18 = sphi %s784_s18, %s1032_s18   ;;  %s734_s17 = sphi %s782_s17, %s1031_s17   ;;  %s730_s16 = sphi %s780_s16, %s1030_s16   ;;  %s726_s15 = sphi %s778_s15, %s1029_s15  }
   0x8   : > { %p55_p0 = scmp.ne.s32.totalorder %s730_s16, %s726_s15  ;;  %p812_p1 = scmp.eq.s32.totalorder %s498_s21, 0 }
   0x9   : > { %p816_p2 = scmp.eq.s32.totalorder %s498_s21, 1  ;;  %p148_p3 = scmp.eq.s32.totalorder %s499_s22, 1 }
   0xa   : > { %s1013_s23 = scalar_select %p812_p1, 1, 0 }
   0xb   : > { %s1014_s24 = scalar_select %p816_p2, 1, 0 }
   0xc   : > { %p822_p4 = por %p812_p1, %p55_p0  ;;  %p500_p5 = scmp.ge.s32.totalorder %s746_s20, 1 }
   0xd   : > { %p827_p6 = por %p148_p3, %p55_p0  ;;  %p155_p7 = scmp.lt.s32.totalorder %s746_s20, 3 }
   0xe   : > { %s1015_s25 = scalar_select %p822_p4, 1, 0 }
   0xf   : > { %s1016_s26 = scalar_select %p827_p6, 1, 0 }
  0x10   : > { %p832_p8 = pnand %p500_p5, %p155_p7  ;;  %s748_s28 = smov [#allocation7]  }
  0x11   : > { %s168_s29 = sshll.u32 %s748_s28, 4  ;;  %s33_s5 = sadd.s32 1, %s742_s19  ;;  %s169_s29 = int_to_ptr.vmem [resolvable:$true] %s168_s29 }
  0x12   : > { %s1017_s27 = scalar_select %p832_p8, 1, 0 }
  0x13   : > { %p531_p10 = pneg %p832_p8  ;;  %s42_s6 = sadd.s32 1, %s734_s17 }
  0x14   : > { %p847_p12 = scmp.ge.s32.totalorder %s33_s5, 2  ;;  %s602_s10 = scalar_lea.hbm %s1005_s1, 64 }
  0x15   : > { %p841_p11 = pnand %p531_p10, %p812_p1  ;;  %p603_p13 = scmp.ne.s32.totalorder %s1005_s1, %s602_s10 }
  0x16   : > { %s1019_s7 = scalar_select %p847_p12, 1, 0 }
  0x17   : > { %p604_p0 = pneg %p841_p11  ;;  %p609_p7 = scmp.lt.u32.totalorder %s602_s10, %s1005_s1 }
  0x19   : > { %p605_p3 = pnand %p604_p0, %p603_p13 }
  0x1b   : > { %p606_p5 = pneg %p605_p3 }
  0x1d   : > { %p611_p10 = pnand %p609_p7, %p606_p5 }
  0x1f   : > { %614 = shalt.err (!%p611_p10)
}
  0x20   : > { %s615_s21 = scalar_lea.vmem %s169_s29, 64  ;;  %p623_p4 = scmp.lt.s32.totalorder %s169_s29, %s169_s29 }
  0x21   : > { %p616_p9 = scmp.ne.s32.totalorder %s169_s29, %s615_s21  ;;  %p624_p8 = scmp.lt.s32.totalorder %s615_s21, %s615_s21 }
  0x23   : > { %p618_p6 = pnand %p616_p9, %p604_p0  ;;  %p625_p2 = por %p624_p8, %p623_p4 }
  0x25   : > { %p619_p1 = pneg %p618_p6 }
  0x27   : > { %p626_p12 = pnand %p625_p2, %p619_p1 }
  0x29   : > { %629 = shalt.err (!%p626_p12)
}
  0x2a   : > { %534 = dma.hbm_to_vmem [thread:$0]  (!%p841_p11), %s1005_s1, 64, %s169_s29, [#allocation8]  }
  0x2b   : > { %p1020_p4 = scmp.ne.s32.totalorder %s1019_s7, 0  ;;  %p49_p1 = scmp.ne.s32.totalorder %s734_s17, %s730_s16 }
  0x2c   : > { %p50_p2 = scmp.eq.s32.totalorder %s746_s20, 0  ;;  %p544_p6 = scmp.lt.s32.totalorder %s746_s20, 2 }
  0x2d   : > { %s1035_s5 = smov (%p1020_p4, %s33_s5), 0  ;;  %p1021_p12 = scmp.ne.s32.totalorder %s1014_s24, 0 }
  0x2e   : > { %s37_s30 = ssub.s32 %s742_s19, %s1035_s5  ;;  %p51_p9 = por %p50_p2, %p49_p1 }
  0x2f   : > { %p40_p8 = scmp.eq.s32.totalorder %s37_s30, 0  ;;  %p879_p13 = por %p1021_p12, %p49_p1 }
  0x30   : > { %s185_s9 = sand.u32 1, %s734_s17   ;;  %s515_s7 = sshll.u32 %s742_s19, 7 }
  0x31   : > { %s887_s10 = scalar_select %p40_p8, %s734_s17, %s42_s6  }
  0x32   : > { %s503_s29 = sshll.u32 %s185_s9, 3  ;;  %s893_s13 = scalar_lea.hbm %s1004_s0, %s515_s7 }
  0x33   : > { %s189_s24 = scalar_lea.vmem [#allocation4], %s503_s29  ;;  %p897_p11 = pnand %p544_p6, %p51_p9 }
  0x34   : > { %s199_s14 = sshll.u32 %s189_s24, 4  ;;  %s186_s6 = scalar_lea.sflag [#allocation5], %s185_s9  ;;  %s895_s14 = int_to_ptr.vmem [resolvable:$true] %s199_s14 }
  0x35   : > { %s630_s22 = scalar_lea.hbm %s893_s13, 128  ;;  %p632_p3 = pneg %p897_p11 }
  0x36   : > { %p631_p0 = scmp.ne.s32.totalorder %s893_s13, %s630_s22  ;;  %s635_s29 = scalar_lea.hbm %s1004_s0, 256 }
  0x37   : > { %p636_p10 = scmp.lt.u32.totalorder %s893_s13, %s1004_s0  ;;  %p637_p4 = scmp.lt.u32.totalorder %s635_s29, %s630_s22 }
  0x38   : > { %p633_p5 = pnand %p632_p3, %p631_p0  ;;  %p639_p2 = scmp.lt.u32.totalorder %s630_s22, %s893_s13 }
  0x39   : > { %p638_p1 = por %p637_p4, %p636_p10 }
  0x3a   : > { %p634_p7 = pneg %p633_p5 }
  0x3b   : > { %p640_p6 = por %p639_p2, %p638_p1 }
  0x3d   : > { %p641_p8 = pnand %p640_p6, %p634_p7 }
  0x3f   : > { %644 = shalt.err (!%p641_p8)
}
  0x40   : > { %s645_s9 = scalar_lea.vmem %s895_s14, 128  ;;  %s749_s12 = smov [#allocation4]  }
  0x41   : > { %p646_p9 = scmp.ne.s32.totalorder %s895_s14, %s645_s9  ;;  %s650_s24 = sshll.u32 %s749_s12, 4  ;;  %s651_s24 = int_to_ptr.vmem [resolvable:$false] %s650_s24 }
  0x42   : > { %s652_s28 = scalar_lea.vmem %s651_s24, 256  ;;  %p653_p5 = scmp.lt.s32.totalorder %s895_s14, %s651_s24 }
  0x43   : > { %p648_p12 = pnand %p646_p9, %p632_p3  ;;  %p654_p10 = scmp.lt.s32.totalorder %s652_s28, %s645_s9 }
  0x45   : > { %p649_p0 = pneg %p648_p12  ;;  %p655_p4 = por %p654_p10, %p653_p5 }
  0x47   : > { %p656_p1 = pnand %p655_p4, %p649_p0 }
  0x49   : > { %659 = shalt.err (!%p656_p1)
}
  0x4a   : > { %538 = dma.hbm_to_vmem [thread:$0]  (!%p897_p11), %s893_s13, 128, %s895_s14, %s186_s6  }
  0x4b   : > { %p1024_p7 = scmp.ne.s32.totalorder %s1017_s27, 0 }
  0x4c   : > { %s929_s22 = sand.u32 (!%p1024_p7), 1, %s730_s16   ;;  %p1025_p3 = scmp.ne.s32.totalorder (!%p1024_p7), %s1015_s25, 0 }
  0x4d   : > { %208 = sbr.rel (%p1024_p7) target bundleno = 836 (0x344), region = 36  ;;  %s507_s30 = sshll.u32 (!%p1024_p7), %s929_s22, 3 }
  0x4e   : > { %s211_s29 = scalar_lea.sflag (!%p1024_p7), [#allocation5], %s929_s22  ;;  %s214_s7 = scalar_lea.vmem (!%p1024_p7), [#allocation4], %s507_s30 }
  0x54   : > { %713 = dma.done.wait (%p1025_p3), %s211_s29, 128  }
  0x55   : > { %715 = vsyncadd (%p1025_p3), %s211_s29, 4294967168  ;;  %p1026_p2 = scmp.ne.s32.totalorder %s1013_s23, 0 }
  0x57   : > { %717 = dma.done.wait (%p1026_p2), [#allocation8], 64  }
  0x58   : > { %719 = vsyncadd (%p1026_p2), [#allocation8], 4294967232  ;;  %v750_v0 = vmov 0.0   ;;  %v249_v1 = vld [vmem:[%s214_s7] sm:$0xf]  ;;  %vm270_vm0 = vcmask 1043456   ;;  %v291_v27 = vlaneseq }
  0x59   : > { %247 = vst [vmem:[#allocation2] sm:$0xf] %v750_v0  ;;  %248 = vst [vmem:[#allocation3] sm:$0xf] %v750_v0  ;;  %518 = vmatprep.subr.mxu0 %v750_v0  ;;  %v254_v3 = vmul.f32 %v249_v1, %v249_v1  ;;  %v509_v7 = vld [vmem:[%s214_s7 + $0x4] sm:$0xf] }
  0x5a   : > { %v263_v8 = vmul.f32 %v509_v7, %v509_v7  ;;  %v289_v17 = vld [vmem:[#allocation7] sm:$0xf]  ;;  %vm751_vm1 = vmmov 0   ;;  %v292_v28 = vand.u32 127, %v291_v27  ;;  %v294_v29 = vshrl.u32 %v291_v27, 7  ;;  %s512_s14 = sshll.u32 %s738_s18, 4 }
  0x5b   : > { %519 = vmatpush3.msk.msra.mxu0 %vm270_vm0, %v289_v17  ;;  %520 = vmatprep.mubr.msk.f32.mxu0 %vm751_vm1, %v750_v0  ;;  %vm297_vm2 = vcmask 31744   ;;  %vm373_vm3 = vcmask 57344   ;;  %v388_v46 = vld [vmem:[%s1006_s2] sm:$0x1]  ;;  %s241_s21 = scalar_lea.vmem [#allocation9], %s929_s22  ;;  %s954_s12 = scalar_lea.hbm %s1008_s4, %s512_s14 }
  0x5c   : > { %v295_v30 = vsub.s32 %v292_v28, %v294_v29  ;;  %v390_v48 = vld [vmem:[%s1007_s3] sm:$0x1]  ;;  %s411_s6 = sshll.u32 %s241_s21, 4  ;;  %s399_s24 = scalar_lea.sflag [#allocation6], %s929_s22  ;;  %s956_s6 = int_to_ptr.vmem [resolvable:$true] %s411_s6 }
  0x5d   : > { %s660_s28 = scalar_lea.vmem %s956_s6, 16  ;;  %s752_s18 = smov [#allocation9]  }
  0x5e   : > { %p661_p11 = scmp.ne.s32.totalorder %s956_s6, %s660_s28  ;;  %s664_s30 = sshll.u32 %s752_s18, 4  ;;  %s665_s30 = int_to_ptr.vmem [resolvable:$false] %s664_s30 }
  0x5f   : > { %s666_s29 = scalar_lea.vmem %s665_s30, 32  ;;  %p667_p9 = scmp.lt.s32.totalorder %s956_s6, %s665_s30 }
  0x60   : > { %v250_v2 = vld [vmem:[#allocation2] sm:$0xf]  ;;  %v253_v4 = vld [vmem:[#allocation3] sm:$0xf]  ;;  %p662_p6 = pnand %p661_p11, %p879_p13  ;;  %p668_p12 = scmp.lt.s32.totalorder %s666_s29, %s660_s28 }
  0x61   : > { %v251_v5 = vadd.f32 %v250_v2, %v249_v1  ;;  %v255_v6 = vadd.f32 %v254_v3, %v253_v4 }
  0x62   : > { %p663_p8 = pneg %p662_p6  ;;  %p669_p0 = por %p668_p12, %p667_p9 }
  0x63   : > { %252 = vst [vmem:[#allocation2] sm:$0xf] %v251_v5  ;;  %256 = vst [vmem:[#allocation3] sm:$0xf] %v255_v6 }
  0x64   : > { %p670_p5 = pnand %p669_p0, %p663_p8 }
  0x6a   : > { %v259_v9 = vld [vmem:[#allocation2] sm:$0xf]  ;;  %v262_v11 = vld [vmem:[#allocation3] sm:$0xf] }
  0x6b   : > { %v260_v10 = vadd.f32 %v509_v7, %v259_v9  ;;  %v264_v12 = vadd.f32 %v263_v8, %v262_v11 }
  0x6d   : > { %261 = vst [vmem:[#allocation2] sm:$0xf] %v260_v10  ;;  %265 = vst [vmem:[#allocation3] sm:$0xf] %v264_v12 }
  0x74   : > { %v269_v13 = vld [vmem:[#allocation2] sm:$0xf]  ;;  %v274_v15 = vld [vmem:[#allocation3] sm:$0xf] }
  0x75   : > { %v271_v14 = vsel %vm270_vm0, %v269_v13, 0.0  ;;  %v275_v16 = vsel %vm270_vm0, %v274_v15, 0.0 }
  0x76   : > { %272 = vadd.xlane.f32.xlu0 %v271_v14 }
  0x7a   : > { %276 = vadd.xlane.f32.xlu0 %v275_v16 }
 0x103   : > { %v273_v18 = vpop.xlane.xlu0 %272 }
 0x104   : > { %v279_v19 = vmul.f32 0.00390625, %v273_v18 }
 0x106   : > { %v280_v20 = vmul.f32 256.0, %v279_v19 }
 0x107   : > { %v277_v21 = vpop.xlane.xlu0 %276 }
 0x108   : > { %v281_v22 = vmul.f32 %v280_v20, %v279_v19 }
 0x10a   : > { %v282_v23 = vsub.f32 %v277_v21, %v281_v22 }
 0x10c   : > { %v284_v24 = vmul.f32 0.003921569, %v282_v23 }
 0x10e   : > { %v285_v25 = vmax.f32 %v284_v24, 0.0 }
 0x110   : > { %v286_v26 = vadd.f32 0.001, %v285_v25 }
 0x112   : > { %598 = vrsqrt.f32 %v286_v26 }
 0x11c   : > { %v599_v31 = vpop.eup %598 }
 0x11d   : > { %v288_v32 = vmul.f32 %v599_v31, %v279_v19 }
 0x11f   : > { %v296_v33 = vrot.slane %v288_v32, %v295_v30 }
 0x121   : > { %521 = vmatmul.mubr.msk.f32.vlgmr.msra.gmra.mrb[0].mxu0 %vm297_vm2, %v296_v33 }
 0x1f4   : > { %v369_v34 = vpop.f32.mrb[0].mxu0 }
 0x1f5   : > { %v522_v35 = vpop.f32.mrb[1].mxu0  ;;  %v374_v36 = vsel %vm373_vm3, %v369_v34, 0.0 }
 0x1f6   : > { %375 = vadd.xlane.f32.xlu1 %v374_v36 }
 0x283   : > { %v376_v37 = vpop.xlane.xlu1 %375 }
 0x284   : > { %v378_v38 = vmul.f32 0.125, %v376_v37 }
 0x286   : > { %v379_v39 = vsub.f32 %v369_v34, %v378_v38 }
 0x288   : > { %v380_v40 = vmul.f32 %v379_v39, %v379_v39 }
 0x28a   : > { %v381_v41 = vsel %vm373_vm3, %v380_v40, 0.0 }
 0x28b   : > { %382 = vadd.xlane.f32.xlu1 %v381_v41 }
 0x318   : > { %v383_v42 = vpop.xlane.xlu1 %382 }
 0x319   : > { %v384_v43 = vmul.f32 0.125, %v383_v42 }
 0x31b   : > { %v385_v44 = vadd.f32 1e-05, %v384_v43 }
 0x31d   : > { %600 = vrsqrt.f32 %v385_v44 }
 0x327   : > { %v601_v45 = vpop.eup %600 }
 0x328   : > { %v387_v47 = vmul.f32 %v601_v45, %v379_v39 }
 0x32a   : > { %v389_v49 = vmul.f32 %v388_v46, %v387_v47 }
 0x32c   : > { %v391_v50 = vadd.f32 %v390_v48, %v389_v49 }
 0x32e   : > { %v392_v51 = vadd.f32 3.0, %v391_v50 }
 0x330   : > { %v394_v52 = vmul.f32 0.16666667, %v392_v51 }
 0x332   : > { %v395_v53 = vmax.f32 %v394_v52, 0.0 }
 0x334   : > { %v396_v54 = vmin.f32 %v395_v53, 1.0 }
 0x336   : > { %397 = vst.msk [vmem:[%s241_s21] sm:$0x1] %vm373_vm3, %v396_v54 }
 0x337   : > { %673 = shalt.err (!%p670_p5)
}
 0x338   : > { %s674_s22 = scalar_lea.hbm %s954_s12, 16  ;;  %s678_s25 = scalar_lea.hbm %s1008_s4, 32 }
 0x339   : > { %p675_p10 = scmp.ne.s32.totalorder %s954_s12, %s674_s22  ;;  %p679_p7 = scmp.lt.u32.totalorder %s954_s12, %s1008_s4 }
 0x33a   : > { %p680_p3 = scmp.lt.u32.totalorder %s678_s25, %s674_s22  ;;  %p682_p11 = scmp.lt.u32.totalorder %s674_s22, %s954_s12 }
 0x33b   : > { %p676_p4 = pnand %p675_p10, %p879_p13 }
 0x33c   : > { %p681_p2 = por %p680_p3, %p679_p7 }
 0x33d   : > { %p677_p1 = pneg %p676_p4 }
 0x33e   : > { %p683_p6 = por %p682_p11, %p681_p2 }
 0x340   : > { %p684_p8 = pnand %p683_p6, %p677_p1 }
 0x342   : > { %687 = shalt.err (!%p684_p8)
}
 0x343   : > { %529 = dma.vmem_to_hbm [thread:$0]  (%p879_p13), %s956_s6, 16, %s954_s12, %s399_s24  }
 0x344 PF: > { %s423_s14 = sand.u32 1, %s726_s15   ;;  %p1027_p9 = scmp.ne.s32.totalorder %s1016_s26, 0 }
 0x345   : > { %p1028_p12 = scmp.ge.s32.totalorder %s746_s20, 2  ;;  %s424_s21 = scalar_lea.sflag [#allocation6], %s423_s14 }
 0x347   : > { %p540_p0 = pnand %p1028_p12, %p1027_p9 }
 0x349   : > { %721 = dma.done.wait (!%p540_p0), %s424_s21, 16  }
 0x34a   : > { %723 = vsyncadd (!%p540_p0), %s424_s21, 4294967280  ;;  %s21_s20 = sadd.s32 1, %s746_s20   ;;  %s1029_s15 = smov %s730_s16 }
 0x34b   : > { %p18_p5 = scmp.ge.s32.totalorder %s21_s20, 4   ;;  %s1030_s16 = smov %s734_s17 }
 0x34c   : > { %s1031_s17 = smov %s887_s10  ;;  %s1032_s18 = smov %s742_s19 }
 0x34d   : > { %s1033_s19 = smov %s1035_s5  ;;  %20 = sbr.rel (!%p18_p5) target bundleno = 7 (0x7), region = 94 }
 0x354   :  { %428 = vsyncpa [#allocation5], 1 }
 0x355   :  { %430 = vsyncpa [#allocation5 + $0x1], 1 }
 0x356   :  { %431 = vsyncpa [#allocation8], 1 }
 0x357   :  { %432 = vsyncpa [#allocation6], 1 }
 0x358   :  { %434 = vsyncpa [#allocation6 + $0x1], 1 }

</bundles_post_ra>
